<compile_context>
chip_gen: v5e
topology: v5e:2x2
jax: 0.10.0
libtpu: 0.0.40
codegen_flags: <defaults>
</compile_context>

<pallas_src>
import functools

import jax
import jax.numpy as jnp
import numpy as np
from jax import lax
from jax.experimental import pallas as pl
from jax.experimental.pallas import tpu as pltpu


def _round_up(x, m):
    return ((x + m - 1) // m) * m


def _spat_attn_kernel(x_ref, w_ref, params_ref, out_ref, *, cq_pad, c, c_v_pad):
    # x_ref:      (C, N)        per-batch input slab
    # w_ref:      (m_tot, C)    stacked Q/K/V(+gamma)/ones projection weights
    # params_ref: (m_tot, 3)    col0 = biases (+1 for ones row),
    #                           col1 = BN scale (rows [0,C)), col2 = BN shift
    # out_ref:    (C, N)
    x = x_ref[...].astype(jnp.bfloat16)
    w = w_ref[...].astype(jnp.bfloat16)
    bias = params_ref[:, 0:1]                                     # (m_tot, 1) f32

    # One fused MXU pass for Q/K/V projections; biases added in f32 after.
    qkv = jnp.dot(w, x, preferred_element_type=jnp.float32) + bias  # (m_tot, N)

    # 8-sublane-aligned segment slices (padded rows are exactly zero).
    q = qkv[0:cq_pad, :].astype(jnp.bfloat16)                     # (cq_pad, N)
    k = qkv[cq_pad:2 * cq_pad, :].astype(jnp.bfloat16)            # (cq_pad, N)
    # V segment already scaled by gamma; row `c` within it is the all-ones row.
    v_aug = qkv[2 * cq_pad:2 * cq_pad + c_v_pad, :].astype(jnp.bfloat16)

    # energy[i, j] = sum_c q[c, i] * k[c, j]   (no materialized transpose)
    energy = lax.dot_general(
        q, k, dimension_numbers=(((0,), (0,)), ((), ())),
        preferred_element_type=jnp.float32)                        # (N, N) f32

    # Unnormalized softmax numerator; cast to bf16 immediately so only one
    # f32 (N, N) array is ever live.
    e_max = jnp.max(energy, axis=-1, keepdims=True)
    p = jnp.exp(energy - e_max).astype(jnp.bfloat16)               # (N, N) bf16

    # out_aug[r, i] = sum_j v_aug[r, j] * p[i, j]; row c (the ones row) yields
    # the per-query softmax denominator, folded into the MXU pass.
    out_aug = lax.dot_general(
        v_aug, p, dimension_numbers=(((1,), (1,)), ((), ())),
        preferred_element_type=jnp.float32)                        # (c_v_pad, N)

    denom = out_aug[c:c + 1, :]                                    # (1, N)
    out = out_aug[0:c, :] * pl.reciprocal(denom, approx=True)      # (C, N)

    out = jnp.maximum(out, 0.0)                                    # ReLU
    out = out * params_ref[0:c, 1:2] + params_ref[0:c, 2:3]        # folded BN
    out_ref[...] = out.astype(out_ref.dtype)


@jax.jit
def spat_attn(x, wq, bq, wk, bk, wv, bv, gamma, bn_scale, bn_shift):
    B, C, H, W = x.shape
    N = H * W
    Cq = wq.shape[0]

    cq_pad = _round_up(Cq, 8)
    c_v_pad = _round_up(C + 1, 8)        # V rows + ones (denominator) row
    m_tot = 2 * cq_pad + c_v_pad

    g = gamma[0, 0]

    # Stacked projection weights (m_tot, C); gamma folded into the V segment.
    w_qkv = jnp.zeros((m_tot, C), dtype=x.dtype)
    w_qkv = w_qkv.at[:Cq, :].set(wq)
    w_qkv = w_qkv.at[cq_pad:cq_pad + Cq, :].set(wk)
    w_qkv = w_qkv.at[2 * cq_pad:2 * cq_pad + C, :].set(g * wv)
    # (row 2*cq_pad + C keeps zero weights: the "ones" row comes from its bias)

    # Packed per-call constants: (m_tot, 3) -> [bias | bn_scale | bn_shift].
    params = jnp.zeros((m_tot, 3), dtype=x.dtype)
    params = params.at[:Cq, 0].set(bq[:, 0])
    params = params.at[cq_pad:cq_pad + Cq, 0].set(bk[:, 0])
    params = params.at[2 * cq_pad:2 * cq_pad + C, 0].set(g * bv[:, 0])
    params = params.at[2 * cq_pad + C, 0].set(1.0)    # ones row -> denominator
    params = params.at[:C, 1].set(bn_scale[:, 0])
    params = params.at[:C, 2].set(bn_shift[:, 0])

    x_flat = x.reshape(B, C, N)          # metadata-only reshape, no HBM copy

    kernel = functools.partial(_spat_attn_kernel,
                               cq_pad=cq_pad, c=C, c_v_pad=c_v_pad)

    out_flat = pl.pallas_call(
        kernel,
        out_shape=jax.ShapeDtypeStruct((B, C, N), x.dtype),
        grid_spec=pltpu.PrefetchScalarGridSpec(
            num_scalar_prefetch=0,
            grid=(B,),
            in_specs=[
                pl.BlockSpec((None, C, N), lambda b: (b, 0, 0)),   # x
                pl.BlockSpec((m_tot, C), lambda b: (0, 0)),        # w_qkv
                pl.BlockSpec((m_tot, 3), lambda b: (0, 0)),        # params
            ],
            out_specs=pl.BlockSpec((None, C, N), lambda b: (b, 0, 0)),
        ),
        compiler_params=pltpu.CompilerParams(
            dimension_semantics=("parallel",)),
    )(x_flat, w_qkv, params)

    return out_flat.reshape(B, C, H, W)


def _reference(x, wq, bq, wk, bk, wv, bv, gamma, bn_scale, bn_shift):
    B, C, H, W = x.shape
    N = H * W
    xf = x.reshape(B, C, N)
    q = jnp.einsum("oc,bcn->bon", wq, xf) + bq[None]          # (B, Cq, N)
    k = jnp.einsum("oc,bcn->bon", wk, xf) + bk[None]          # (B, Cq, N)
    v = jnp.einsum("oc,bcn->bon", wv, xf) + bv[None]          # (B, C, N)
    energy = jnp.einsum("bci,bcj->bij", q, k)                 # (B, N, N)
    attn = jax.nn.softmax(energy, axis=-1)
    out = jnp.einsum("bcj,bij->bci", v, attn)                 # (B, C, N)
    out = gamma[0, 0] * out
    out = jnp.maximum(out, 0.0)
    out = out * bn_scale[None] + bn_shift[None]
    return out.reshape(B, C, H, W)


if __name__ == "__main__":
    # Small shapes consistent with the module (SARes in SSNet_AAEE_KSC uses ratio=4).
    B, C, H, W = 2, 16, 16, 16
    ratio = 4
    Cq = C // ratio

    key = jax.random.PRNGKey(0)
    keys = jax.random.split(key, 10)

    x = jax.random.normal(keys[0], (B, C, H, W), dtype=jnp.float32)

    # 1x1 conv weights (out_ch, in_ch), biases as (out_ch, 1) columns.
    wq = 0.1 * jax.random.normal(keys[1], (Cq, C), dtype=jnp.float32)
    bq = 0.1 * jax.random.normal(keys[2], (Cq, 1), dtype=jnp.float32)
    wk = 0.1 * jax.random.normal(keys[3], (Cq, C), dtype=jnp.float32)
    bk = 0.1 * jax.random.normal(keys[4], (Cq, 1), dtype=jnp.float32)
    wv = 0.1 * jax.random.normal(keys[5], (C, C), dtype=jnp.float32)
    bv = 0.1 * jax.random.normal(keys[6], (C, 1), dtype=jnp.float32)

    # gamma (PyTorch inits to 0; use a nonzero deterministic value here).
    gamma = jnp.full((1, 1), 0.5, dtype=jnp.float32)

    # Eval-mode BatchNorm2d params folded to per-channel scale/shift.
    bn_weight = 1.0 + 0.1 * jax.random.normal(keys[7], (C,), dtype=jnp.float32)
    bn_bias = 0.1 * jax.random.normal(keys[8], (C,), dtype=jnp.float32)
    running_mean = 0.1 * jax.random.normal(keys[9], (C,), dtype=jnp.float32)
    running_var = jnp.ones((C,), dtype=jnp.float32)
    eps = 1e-5
    bn_scale = (bn_weight / jnp.sqrt(running_var + eps)).reshape(C, 1)
    bn_shift = (bn_bias - running_mean * bn_scale.reshape(-1)).reshape(C, 1)

    out = spat_attn(x, wq, bq, wk, bk, wv, bv, gamma, bn_scale, bn_shift)
    out = jax.block_until_ready(out)

    ref = _reference(x, wq, bq, wk, bk, wv, bv, gamma, bn_scale, bn_shift)
    np.testing.assert_allclose(np.asarray(out), np.asarray(ref), rtol=2e-2, atol=2e-2)

    print("KERNEL_OK")
</pallas_src>

<mosaic_0001>
module attributes {stable_mosaic.version = 11 : i64} {
  func.func @_spat_attn_kernel(%arg0: i32, %arg1: memref<1x16x256xf32, #tpu.memory_space<vmem>>, %arg2: memref<40x16xf32, #tpu.memory_space<vmem>>, %arg3: memref<40x3xf32, #tpu.memory_space<vmem>>, %arg4: memref<1x16x256xf32, #tpu.memory_space<vmem>>) attributes {dimension_semantics = [#tpu.dimension_semantics<parallel>], iteration_bounds = array<i64: 2>, scalar_prefetch = 0 : i64, scratch_operands = 0 : i64, tpu.core_type = #tpu.core_type<tc>, window_params = [{transform_indices = @transform_0, window_bounds = array<i64: 1, 16, 256>}, {pipeline_mode = #tpu.pipeline_mode<synchronous>, transform_indices = @transform_1, window_bounds = array<i64: 40, 16>}, {pipeline_mode = #tpu.pipeline_mode<synchronous>, transform_indices = @transform_2, window_bounds = array<i64: 40, 3>}, {transform_indices = @transform_3, window_bounds = array<i64: 1, 16, 256>}]} {
    %c0 = arith.constant 0 : index
    %c0_0 = arith.constant 0 : index
    %c0_1 = arith.constant 0 : index
    %0 = vector.load %arg1[%c0, %c0_0, %c0_1] : memref<1x16x256xf32, #tpu.memory_space<vmem>>, vector<1x16x256xf32>
    %1 = vector.shape_cast %0 : vector<1x16x256xf32> to vector<16x256xf32>
    %2 = arith.truncf %1 : vector<16x256xf32> to vector<16x256xbf16>
    %c0_2 = arith.constant 0 : index
    %c0_3 = arith.constant 0 : index
    %3 = vector.load %arg2[%c0_2, %c0_3] : memref<40x16xf32, #tpu.memory_space<vmem>>, vector<40x16xf32>
    %4 = arith.truncf %3 : vector<40x16xf32> to vector<40x16xbf16>
    %c0_4 = arith.constant 0 : index
    %c0_5 = arith.constant 0 : index
    %5 = vector.load %arg3[%c0_4, %c0_5] : memref<40x3xf32, #tpu.memory_space<vmem>>, vector<40x1xf32>
    %cst = arith.constant dense<0.000000e+00> : vector<40x256xf32>
    %6 = tpu.matmul %4, %2, %cst {dimension_numbers = #tpu.dot_dimension_numbers<[1], [0], [0], [1], [0, 0, 1, 1], [], []>} : vector<40x16xbf16>, vector<16x256xbf16>, vector<40x256xf32> -> vector<40x256xf32>
    %7 = vector.broadcast %5 : vector<40x1xf32> to vector<40x256xf32>
    %8 = arith.addf %6, %7 : vector<40x256xf32>
    %9 = vector.extract_strided_slice %8 {offsets = [0, 0], sizes = [8, 256], strides = [1, 1]} : vector<40x256xf32> to vector<8x256xf32>
    %10 = arith.truncf %9 : vector<8x256xf32> to vector<8x256xbf16>
    %11 = vector.extract_strided_slice %8 {offsets = [8, 0], sizes = [8, 256], strides = [1, 1]} : vector<40x256xf32> to vector<8x256xf32>
    %12 = arith.truncf %11 : vector<8x256xf32> to vector<8x256xbf16>
    %13 = vector.extract_strided_slice %8 {offsets = [16, 0], sizes = [24, 256], strides = [1, 1]} : vector<40x256xf32> to vector<24x256xf32>
    %14 = arith.truncf %13 : vector<24x256xf32> to vector<24x256xbf16>
    %cst_6 = arith.constant dense<0.000000e+00> : vector<256x256xf32>
    %15 = tpu.matmul %10, %12, %cst_6 {dimension_numbers = #tpu.dot_dimension_numbers<[0], [0], [1], [1], [0, 1, 1, 1], [], []>} : vector<8x256xbf16>, vector<8x256xbf16>, vector<256x256xf32> -> vector<256x256xf32>
    %cst_7 = arith.constant dense<0xFF800000> : vector<256xf32>
    %16 = vector.multi_reduction <maximumf>, %15, %cst_7 [1] : vector<256x256xf32> to vector<256xf32>
    %17 = vector.shape_cast %16 : vector<256xf32> to vector<256x1xf32>
    %18 = vector.broadcast %17 : vector<256x1xf32> to vector<256x256xf32>
    %19 = arith.subf %15, %18 : vector<256x256xf32>
    %20 = math.exp %19 : vector<256x256xf32>
    %21 = arith.truncf %20 : vector<256x256xf32> to vector<256x256xbf16>
    %cst_8 = arith.constant dense<0.000000e+00> : vector<24x256xf32>
    %22 = tpu.matmul %14, %21, %cst_8 {dimension_numbers = #tpu.dot_dimension_numbers<[1], [1], [0], [0], [0, 0, 1, 0], [], []>} : vector<24x256xbf16>, vector<256x256xbf16>, vector<24x256xf32> -> vector<24x256xf32>
    %23 = vector.extract_strided_slice %22 {offsets = [16, 0], sizes = [1, 256], strides = [1, 1]} : vector<24x256xf32> to vector<1x256xf32>
    %24 = vector.extract_strided_slice %22 {offsets = [0, 0], sizes = [16, 256], strides = [1, 1]} : vector<24x256xf32> to vector<16x256xf32>
    %25 = tpu.reciprocal %23 {approx = true} : vector<1x256xf32> -> vector<1x256xf32>
    %26 = vector.broadcast %25 : vector<1x256xf32> to vector<16x256xf32>
    %27 = arith.mulf %24, %26 : vector<16x256xf32>
    %cst_9 = arith.constant 0.000000e+00 : f32
    %28 = vector.broadcast %cst_9 : f32 to vector<16x256xf32>
    %29 = arith.maximumf %27, %28 : vector<16x256xf32>
    %c0_10 = arith.constant 0 : index
    %c1 = arith.constant 1 : index
    %30 = vector.load %arg3[%c0_10, %c1] : memref<40x3xf32, #tpu.memory_space<vmem>>, vector<16x1xf32>
    %31 = vector.broadcast %30 : vector<16x1xf32> to vector<16x256xf32>
    %32 = arith.mulf %29, %31 : vector<16x256xf32>
    %c0_11 = arith.constant 0 : index
    %c2 = arith.constant 2 : index
    %33 = vector.load %arg3[%c0_11, %c2] : memref<40x3xf32, #tpu.memory_space<vmem>>, vector<16x1xf32>
    %34 = vector.broadcast %33 : vector<16x1xf32> to vector<16x256xf32>
    %35 = arith.addf %32, %34 : vector<16x256xf32>
    %c0_12 = arith.constant 0 : index
    %c0_13 = arith.constant 0 : index
    %c0_14 = arith.constant 0 : index
    %36 = vector.load %arg4[%c0_12, %c0_13, %c0_14] : memref<1x16x256xf32, #tpu.memory_space<vmem>>, vector<1x16x256xf32>
    %37 = vector.shape_cast %36 : vector<1x16x256xf32> to vector<16x256xf32>
    %38 = vector.shape_cast %35 : vector<16x256xf32> to vector<1x16x256xf32>
    tpu.vector_store %arg4[%c0_12, %c0_13, %c0_14], %38 {strides = array<i32>} : memref<1x16x256xf32, #tpu.memory_space<vmem>>, vector<1x16x256xf32>,
    return
  }
  func.func @transform_0(%arg0: i32) -> (i32, i32, i32) {
    %c0_i32 = arith.constant 0 : i32
    %c0_i32_0 = arith.constant 0 : i32
    %c0_i32_1 = arith.constant 0 : i32
    return %arg0, %c0_i32, %c0_i32_0 : i32, i32, i32
  }
  func.func @transform_1(%arg0: i32) -> (i32, i32) {
    %c0_i32 = arith.constant 0 : i32
    %c0_i32_0 = arith.constant 0 : i32
    %c0_i32_1 = arith.constant 0 : i32
    return %c0_i32, %c0_i32_0 : i32, i32
  }
  func.func @transform_2(%arg0: i32) -> (i32, i32) {
    %c0_i32 = arith.constant 0 : i32
    %c0_i32_0 = arith.constant 0 : i32
    %c0_i32_1 = arith.constant 0 : i32
    return %c0_i32, %c0_i32_0 : i32, i32
  }
  func.func @transform_3(%arg0: i32) -> (i32, i32, i32) {
    %c0_i32 = arith.constant 0 : i32
    %c0_i32_0 = arith.constant 0 : i32
    %c0_i32_1 = arith.constant 0 : i32
    return %arg0, %c0_i32, %c0_i32_0 : i32, i32, i32
  }
}

</mosaic_0001>

<bundles_post_ra>
// kernel: spat_attn.1
= control target key start
LH: loop header
LB: loop body
LE: loop exit
PB: predicated region body
PF: predicated region fallthrough
CT: control target
= control target key end

     0   :  { %s1260_s12 = smov 0   ;;  %s1756_s0 = inlined_call_operand.vmem [shape: f32[2,16,256], index: 0, kind: input, shape index: {}]   ;;  %s1757_s1 = inlined_call_operand.vmem [shape: f32[40,16], index: 1, kind: input, shape index: {}]   ;;  %s1758_s2 = inlined_call_operand.vmem [shape: f32[40,3], index: 2, kind: input, shape index: {}]   ;;  %s1759_s3 = inlined_call_operand.vmem [shape: f32[2,16,256], index: 3, kind: output, shape index: {}]  }
   0x1 LB: > { %s1029_s13 = sadd.s32 4294967295, %s1235_s12   ;;  %p1033_p0 = scmp.ge.s32.totalorder %s1235_s12, 1  ;;  %s1235_s12 = sphi %s1260_s12, %s13_s12  }
   0x2   : > { %p137_p1 = scmp.lt.s32.totalorder %s1235_s12, 3 }
   0x4   : > { %p138_p2 = pnand %p1033_p0, %p137_p1 }
   0x6   : > { %141 = sbr.rel (%p138_p2) target bundleno = 1081 (0x439), region = 32 }
   0xb   : > { %p161_p3 = scmp.lt.s32.totalorder %s1029_s13, 1  ;;  %v186_v0 = vld [vmem:[%s1758_s2] sm:$0xff]  ;;  %v1237_v1 = vmov 0   ;;  %v179_v3 = vld [vmem:[%s1757_s1 + $0x8] sm:$0xff]  ;;  %vm216_vm0 = vcmask 130048   ;;  %vm353_vm1 = vcmask 1043456  }
   0xc   : > { %1091 = vset.pattern.permute.xlu0 %v1237_v1  ;;  %1092 = vset.pattern.permute.xlu2 %v1237_v1  ;;  %v178_v2 = vld [vmem:[%s1757_s1] sm:$0xff]  ;;  %v187_v9 = vld [vmem:[%s1758_s2 + $0x8] sm:$0xff]  ;;  %vm304_vm2 = vcmask 64512  }
   0xd   : > { %s1830_s13 = smov (!%p161_p3, %s1029_s13), 1  ;;  %193 = vperm.xlu0 %1091, %v186_v0   ;;  %v183_v11 = vpack.c.bf16 %v179_v3, %v178_v2 }
   0xe   : > { %s1078_s16 = sshll.u32 %s1830_s13, 5 }
   0xf   : > { %s165_s19 = scalar_lea.vmem %s1756_s0, %s1078_s16  ;;  %s170_s20 = scalar_lea.vmem %s1759_s3, %s1078_s16 }
  0x10   : > { %v172_v4 = vld [vmem:[%s165_s19] sm:$0xff]  ;;  %v174_v5 = vld [vmem:[%s165_s19 + $0x10] sm:$0xff]  ;;  %v173_v6 = vld [vmem:[%s165_s19 + $0x8] sm:$0xff] }
  0x11   : > { %v176_v7 = vpack.c.bf16 %v174_v5, %v172_v4  ;;  %v175_v8 = vld [vmem:[%s165_s19 + $0x18] sm:$0xff] }
  0x12   : > { %v177_v10 = vpack.c.bf16 %v175_v8, %v173_v6 }
  0x13   : > { %233 = vmatpush.bf16.msra.mxu0 %v176_v7 }
  0x14   : > { %256 = vmatpush.bf16.msra.mxu1 %v177_v10 }
  0x15   : > { %198 = vperm.xlu0 %1091, %v187_v9  }
  0x16   : > { %1038 = vmatmul.msk.bf16.vlgmr.msra.gmra.mxu0 %vm216_vm0, %v183_v11 }
  0x17   : > { %1041 = vmatmul.msk.bf16.vlgmr.msra.gmra.mxu1 %vm216_vm0, %v183_v11 }
  0x7f   : > { %v194_v12 = vpop.permute.xlu0 %193 }
  0x87   : > { %v199_v19 = vpop.permute.xlu0 %198 }
  0x93   : > { %v235_v13 = vpop.f32.mrf.mxu0 }
  0x94   : > { %v236_v14 = vadd.f32 %v235_v13, %v194_v12  ;;  %v258_v15 = vpop.f32.mrf.mxu1 }
  0x95   : > { %v259_v16 = vadd.f32 %v258_v15, %v194_v12 }
  0x96   : > { %v272_v17 = vpack.c.bf16 %v236_v14, %v236_v14 }
  0x97   : > { %v273_v18 = vpack.c.bf16 %v259_v16, %v259_v16 }
  0x99   : > { %280 = vxpose.binary.xlu1.c.b16.start.end [1/2] (short) %v273_v18, %v272_v17, 128 }
  0x9b   : > { %v237_v20 = vpop.f32.mrf.mxu0 }
  0x9c   : > { %v238_v21 = vadd.f32 %v237_v20, %v199_v19  ;;  %v260_v22 = vpop.f32.mrf.mxu1 }
  0x9d   : > { %v261_v23 = vadd.f32 %v260_v22, %v199_v19 }
  0x9e   : > { %v274_v24 = vpack.c.bf16 %v238_v21, %v238_v21 }
  0x9f   : > { %v275_v25 = vpack.c.bf16 %v261_v23, %v261_v23 }
  0xa0   : > { %v355_v26 = vsel %vm353_vm1, %v274_v24, 0 }
  0xa1   : > { %367 = vmatpush.bf16.msra.mxu2 %v355_v26  ;;  %v358_v27 = vsel %vm353_vm1, %v275_v25, 0 }
  0xa2   : > { %456 = vmatpush.bf16.msra.mxu3 %v358_v27 }
 0x145   : > { %v288_v28 = vpop.trf.xlu1 }
 0x146   : > { %1044 = vmatmul.msk.bf16.vlgmr.msra.gmra.mxu2 %vm304_vm2, %v288_v28  ;;  %1060 = vmatmul.msk.bf16.vlgmr.msra.gmra.mxu3 %vm304_vm2, %v288_v28 }
 0x14d   : > { %v289_v29 = vpop.trf.xlu1 }
 0x155   : > { %v290_v30 = vpop.trf.xlu1 }
 0x156   : > { %1045 = vmatmul.msk.bf16.gmra.mxu2 %vm304_vm2, %v290_v30  ;;  %1061 = vmatmul.msk.bf16.gmra.mxu3 %vm304_vm2, %v290_v30 }
 0x15d   : > { %v291_v31 = vpop.trf.xlu1 }
 0x165   : > { %v292_v32 = vpop.trf.xlu1 }
 0x166   : > { %1046 = vmatmul.msk.bf16.gmra.mxu2 %vm304_vm2, %v292_v32  ;;  %1062 = vmatmul.msk.bf16.gmra.mxu3 %vm304_vm2, %v292_v32 }
 0x16d   : > { %v293_v33 = vpop.trf.xlu1 }
 0x175   : > { %v294_v34 = vpop.trf.xlu1 }
 0x176   : > { %1047 = vmatmul.msk.bf16.gmra.mxu2 %vm304_vm2, %v294_v34  ;;  %1063 = vmatmul.msk.bf16.gmra.mxu3 %vm304_vm2, %v294_v34 }
 0x17d   : > { %v295_v35 = vpop.trf.xlu1 }
 0x185   : > { %v296_v36 = vpop.trf.xlu1 }
 0x186   : > { %1048 = vmatmul.msk.bf16.gmra.mxu2 %vm304_vm2, %v296_v36  ;;  %1064 = vmatmul.msk.bf16.gmra.mxu3 %vm304_vm2, %v296_v36 }
 0x18d   : > { %v297_v37 = vpop.trf.xlu1 }
 0x195   : > { %v298_v38 = vpop.trf.xlu1 }
 0x196   : > { %1049 = vmatmul.msk.bf16.gmra.mxu2 %vm304_vm2, %v298_v38  ;;  %1065 = vmatmul.msk.bf16.gmra.mxu3 %vm304_vm2, %v298_v38 }
 0x19d   : > { %v299_v39 = vpop.trf.xlu1 }
 0x1a5   : > { %v300_v40 = vpop.trf.xlu1 }
 0x1a6   : > { %1050 = vmatmul.msk.bf16.gmra.mxu2 %vm304_vm2, %v300_v40  ;;  %1066 = vmatmul.msk.bf16.gmra.mxu3 %vm304_vm2, %v300_v40 }
 0x1ad   : > { %v301_v41 = vpop.trf.xlu1 }
 0x1b5   : > { %v302_v42 = vpop.trf.xlu1 }
 0x1b6   : > { %1051 = vmatmul.msk.bf16.gmra.mxu2 %vm304_vm2, %v302_v42  ;;  %1067 = vmatmul.msk.bf16.gmra.mxu3 %vm304_vm2, %v302_v42 }
 0x1bd   : > { %v303_v10 = vpop.trf.xlu1 }
 0x1c6   : > { %1052 = vmatmul.msk.bf16.gmra.mxu2 %vm304_vm2, %v289_v29  ;;  %1068 = vmatmul.msk.bf16.gmra.mxu3 %vm304_vm2, %v289_v29 }
 0x1c9   : > { %v1308_v43 = vpop.f32.mrf.mxu2  ;;  %v1310_v44 = vpop.f32.mrf.mxu3 }
 0x1ca   : > { %1781 = vst [vmem:[#allocation2_spill] sm:$0xff] %v1308_v43  ;;  %v538_v23 = vmax.f32 %v1308_v43, %v1310_v44 }
 0x1cb   : > { %1782 = vst [vmem:[#allocation3_spill] sm:$0xff] %v1310_v44 }
 0x1d1   : > { %v1312_v45 = vpop.f32.mrf.mxu2  ;;  %v1314_v46 = vpop.f32.mrf.mxu3 }
 0x1d2   : > { %1783 = vst [vmem:[#allocation4_spill] sm:$0xff] %v1312_v45 }
 0x1d3   : > { %1784 = vst [vmem:[#allocation5_spill] sm:$0xff] %v1314_v46 }
 0x1d6   : > { %1053 = vmatmul.msk.bf16.gmra.mxu2 %vm304_vm2, %v291_v31  ;;  %1069 = vmatmul.msk.bf16.gmra.mxu3 %vm304_vm2, %v291_v31 }
 0x1d9   : > { %v1318_v47 = vpop.f32.mrf.mxu2  ;;  %v1320_v48 = vpop.f32.mrf.mxu3 }
 0x1da   : > { %v544_v19 = vmax.f32 %v1318_v47, %v1320_v48 }
 0x1e1   : > { %v1322_v49 = vpop.f32.mrf.mxu2  ;;  %v1324_v50 = vpop.f32.mrf.mxu3 }
 0x1e6   : > { %1054 = vmatmul.msk.bf16.gmra.mxu2 %vm304_vm2, %v293_v33  ;;  %1070 = vmatmul.msk.bf16.gmra.mxu3 %vm304_vm2, %v293_v33 }
 0x1e9   : > { %v1328_v51 = vpop.f32.mrf.mxu2  ;;  %v1330_v52 = vpop.f32.mrf.mxu3 }
 0x1ea   : > { %v550_v14 = vmax.f32 %v1328_v51, %v1330_v52 }
 0x1f1   : > { %v1332_v53 = vpop.f32.mrf.mxu2  ;;  %v1334_v54 = vpop.f32.mrf.mxu3 }
 0x1f2   : > { %v553_v32 = vmax.f32 %v1332_v53, %v1334_v54 }
 0x1f6   : > { %1055 = vmatmul.msk.bf16.gmra.mxu2 %vm304_vm2, %v295_v35  ;;  %1071 = vmatmul.msk.bf16.gmra.mxu3 %vm304_vm2, %v295_v35  ;;  %v547_v35 = vmax.f32 %v1322_v49, %v1324_v50 }
 0x1f9   : > { %v1338_v55 = vpop.f32.mrf.mxu2  ;;  %v1340_v56 = vpop.f32.mrf.mxu3 }
 0x1fa   : > { %v556_v26 = vmax.f32 %v1338_v55, %v1340_v56 }
 0x201   : > { %v1342_v57 = vpop.f32.mrf.mxu2  ;;  %v1344_v58 = vpop.f32.mrf.mxu3 }
 0x202   : > { %v559_v29 = vmax.f32 %v1342_v57, %v1344_v58 }
 0x206   : > { %1056 = vmatmul.msk.bf16.gmra.mxu2 %vm304_vm2, %v297_v37  ;;  %1072 = vmatmul.msk.bf16.gmra.mxu3 %vm304_vm2, %v297_v37 }
 0x209   : > { %v1348_v59 = vpop.f32.mrf.mxu2  ;;  %v1350_v60 = vpop.f32.mrf.mxu3 }
 0x20a   : > { %v562_v18 = vmax.f32 %v1348_v59, %v1350_v60 }
 0x211   : > { %v1352_v61 = vpop.f32.mrf.mxu2  ;;  %v1354_v62 = vpop.f32.mrf.mxu3 }
 0x212   : > { %v565_v22 = vmax.f32 %v1352_v61, %v1354_v62 }
 0x216   : > { %1057 = vmatmul.msk.bf16.gmra.mxu2 %vm304_vm2, %v299_v39  ;;  %1073 = vmatmul.msk.bf16.gmra.mxu3 %vm304_vm2, %v299_v39  ;;  %v541_v39 = vmax.f32 %v1312_v45, %v1314_v46 }
 0x219   : > { %v1358_v63 = vpop.f32.mrf.mxu2  ;;  %v1360_v0 = vpop.f32.mrf.mxu3 }
 0x21a   : > { %v568_v8 = vmax.f32 %v1358_v63, %v1360_v0 }
 0x221   : > { %v1362_v1 = vpop.f32.mrf.mxu2  ;;  %v1364_v2 = vpop.f32.mrf.mxu3 }
 0x222   : > { %v571_v13 = vmax.f32 %v1362_v1, %v1364_v2 }
 0x226   : > { %1058 = vmatmul.msk.bf16.gmra.mxu2 %vm304_vm2, %v301_v41  ;;  %1074 = vmatmul.msk.bf16.gmra.mxu3 %vm304_vm2, %v301_v41 }
 0x229   : > { %v1368_v3 = vpop.f32.mrf.mxu2  ;;  %v1370_v4 = vpop.f32.mrf.mxu3 }
 0x22a   : > { %v574_v5 = vmax.f32 %v1368_v3, %v1370_v4 }
 0x22c   : > { %575 = vmax.xlane.f32.xlu2 %v574_v5 }
 0x231   : > { %v1374_v6 = vpop.f32.mrf.mxu2  ;;  %v1376_v7 = vpop.f32.mrf.mxu3 }
 0x232   : > { %v577_v9 = vmax.f32 %v1374_v6, %v1376_v7 }
 0x234   : > { %569 = vmax.xlane.f32.xlu2 %v568_v8  ;;  %578 = vmax.xlane.f32.xlu0 %v577_v9 }
 0x236   : > { %1059 = vmatmul.msk.bf16.gmra.mxu2 %vm304_vm2, %v303_v10  ;;  %1075 = vmatmul.msk.bf16.gmra.mxu3 %vm304_vm2, %v303_v10 }
 0x239   : > { %v1384_v11 = vpop.f32.mrf.mxu2  ;;  %v1386_v12 = vpop.f32.mrf.mxu3 }
 0x23a   : > { %v580_v15 = vmax.f32 %v1384_v11, %v1386_v12 }
 0x23c   : > { %572 = vmax.xlane.f32.xlu2 %v571_v13  ;;  %551 = vmax.xlane.f32.xlu0 %v550_v14 }
 0x23d   : > { %581 = vmax.xlane.f32.xlu1 %v580_v15 }
 0x241   : > { %v1394_v16 = vpop.f32.mrf.mxu2  ;;  %v1396_v17 = vpop.f32.mrf.mxu3 }
 0x242   : > { %v583_v42 = vmax.f32 %v1394_v16, %v1396_v17 }
 0x244   : > { %563 = vmax.xlane.f32.xlu2 %v562_v18  ;;  %545 = vmax.xlane.f32.xlu0 %v544_v19 }
 0x249   : > { %v1402_v20 = vpop.f32.mrf.mxu2  ;;  %v1404_v21 = vpop.f32.mrf.mxu3 }
 0x24c   : > { %566 = vmax.xlane.f32.xlu2 %v565_v22  ;;  %539 = vmax.xlane.f32.xlu0 %v538_v23 }
 0x251   : > { %v1410_v24 = vpop.f32.mrf.mxu2  ;;  %v1412_v25 = vpop.f32.mrf.mxu3 }
 0x254   : > { %557 = vmax.xlane.f32.xlu2 %v556_v26 }
 0x259   : > { %v1416_v27 = vpop.f32.mrf.mxu2  ;;  %v1418_v28 = vpop.f32.mrf.mxu3 }
 0x25c   : > { %560 = vmax.xlane.f32.xlu2 %v559_v29 }
 0x261   : > { %v1422_v30 = vpop.f32.mrf.mxu2  ;;  %v1424_v31 = vpop.f32.mrf.mxu3 }
 0x264   : > { %554 = vmax.xlane.f32.xlu2 %v553_v32 }
 0x269   : > { %v1428_v33 = vpop.f32.mrf.mxu2  ;;  %v1430_v34 = vpop.f32.mrf.mxu3 }
 0x26a   : > { %v598_v36 = vmax.f32 %v1428_v33, %v1430_v34 }
 0x26c   : > { %548 = vmax.xlane.f32.xlu2 %v547_v35  ;;  %599 = vmax.xlane.f32.xlu0 %v598_v36  ;;  %v180_v35 = vld [vmem:[%s1757_s1 + $0x10] sm:$0xff]  ;;  %v181_v36 = vld [vmem:[%s1757_s1 + $0x18] sm:$0xff] }
 0x271   : > { %v1436_v37 = vpop.f32.mrf.mxu2  ;;  %v1438_v38 = vpop.f32.mrf.mxu3 }
 0x272   : > { %v601_v10 = vmax.f32 %v1436_v37, %v1438_v38 }
 0x274   : > { %542 = vmax.xlane.f32.xlu2 %v541_v39  ;;  %v184_v39 = vpack.c.bf16 %v181_v36, %v180_v35 }
 0x276   : > { %1039 = vmatmul.msk.bf16.gmra.mxu0 %vm216_vm0, %v184_v39  ;;  %1042 = vmatmul.msk.bf16.gmra.mxu1 %vm216_vm0, %v184_v39 }
 0x279   : > { %v1442_v40 = vpop.f32.mrf.mxu2  ;;  %v1444_v41 = vpop.f32.mrf.mxu3 }
 0x27a   : > { %v604_v5 = vmax.f32 %v1442_v40, %v1444_v41 }
 0x27c   : > { %584 = vmax.xlane.f32.xlu2 %v583_v42  ;;  %605 = vmax.xlane.f32.xlu0 %v604_v5 }
 0x281   : > { %v1450_v8 = vpop.f32.mrf.mxu2  ;;  %v1452_v9 = vpop.f32.mrf.mxu3 }
 0x282   : > { %v607_v15 = vmax.f32 %v1450_v8, %v1452_v9 }
 0x284   : > { %602 = vmax.xlane.f32.xlu2 %v601_v10 }
 0x289   : > { %v1456_v13 = vpop.f32.mrf.mxu2  ;;  %v1458_v14 = vpop.f32.mrf.mxu3 }
 0x28a   : > { %1785 = vst [vmem:[#allocation6_spill] sm:$0xff] %v1456_v13  ;;  %v610_v18 = vmax.f32 %v1456_v13, %v1458_v14 }
 0x28b   : > { %1786 = vst [vmem:[#allocation7_spill] sm:$0xff] %v1458_v14 }
 0x28c   : > { %608 = vmax.xlane.f32.xlu2 %v607_v15  ;;  %611 = vmax.xlane.f32.xlu0 %v610_v18 }
 0x291   : > { %v1464_v19 = vpop.f32.mrf.mxu2  ;;  %v1466_v22 = vpop.f32.mrf.mxu3 }
 0x292   : > { %1787 = vst [vmem:[#allocation8_spill] sm:$0xff] %v1464_v19  ;;  %v613_v23 = vmax.f32 %v1464_v19, %v1466_v22 }
 0x293   : > { %1788 = vst [vmem:[#allocation9_spill] sm:$0xff] %v1466_v22 }
 0x294   : > { %614 = vmax.xlane.f32.xlu2 %v613_v23 }
 0x299   : > { %v1470_v26 = vpop.f32.mrf.mxu2  ;;  %v1472_v29 = vpop.f32.mrf.mxu3 }
 0x29a   : > { %1789 = vst [vmem:[#allocation10_spill] sm:$0xff] %v1470_v26  ;;  %v616_v32 = vmax.f32 %v1470_v26, %v1472_v29 }
 0x29b   : > { %1790 = vst [vmem:[#allocation11_spill] sm:$0xff] %v1472_v29 }
 0x29c   : > { %617 = vmax.xlane.f32.xlu0 %v616_v32 }
 0x29f   : > { %v1482_v42 = vpop.xlane.xlu2 %575 }
 0x2a1   : > { %v1486_v5 = vpop.f32.mrf.mxu2  ;;  %v1488_v10 = vpop.f32.mrf.mxu3 }
 0x2a2   : > { %1791 = vst [vmem:[#allocation12_spill] sm:$0xff] %v1486_v5  ;;  %v619_v15 = vmax.f32 %v1486_v5, %v1488_v10 }
 0x2a3   : > { %1792 = vst [vmem:[#allocation13_spill] sm:$0xff] %v1488_v10 }
 0x2a4   : > { %620 = vmax.xlane.f32.xlu2 %v619_v15 }
 0x2a7   : > { %v570_v18 = vpop.xlane.xlu2 %569 }
 0x2a8   : > { %v654_v35 = vsub.f32 %v1358_v63, %v570_v18  ;;  %v655_v39 = vsub.f32 %v1360_v0, %v570_v18 }
 0x2a9   : > { %v1492_v23 = vpop.f32.mrf.mxu2  ;;  %v1494_v32 = vpop.f32.mrf.mxu3 }
 0x2aa   : > { %1793 = vst [vmem:[#allocation14_spill] sm:$0xff] %v1492_v23  ;;  %v622_v36 = vmax.f32 %v1492_v23, %v1494_v32  ;;  %v738_v14 = vmul.f32 1.442695, %v654_v35  ;;  %v740_v13 = vmul.f32 1.442695, %v655_v39 }
 0x2ab   : > { %1794 = vst [vmem:[#allocation15_spill] sm:$0xff] %v1494_v32 }
 0x2ac   : > { %623 = vmax.xlane.f32.xlu0 %v622_v36  ;;  %1097 = vpow2.f32 %v738_v14 }
 0x2ad   : > { %1099 = vpow2.f32 %v740_v13 }
 0x2af   : > { %v573_v22 = vpop.xlane.xlu2 %572 }
 0x2b0   : > { %v656_v19 = vsub.f32 %v1362_v1, %v573_v22  ;;  %v657_v15 = vsub.f32 %v1364_v2, %v573_v22 }
 0x2b1   : > { %v1502_v29 = vpop.f32.mrf.mxu2  ;;  %v1504_v26 = vpop.f32.mrf.mxu3 }
 0x2b2   : > { %1795 = vst [vmem:[#allocation16_spill] sm:$0xff] %v1502_v29  ;;  %v742_v10 = vmul.f32 1.442695, %v656_v19  ;;  %v744_v63 = vmul.f32 1.442695, %v657_v15  ;;  %v625_v5 = vmax.f32 %v1502_v29, %v1504_v26  ;;  %v1508_v18 = vpop.eup %1097 }
 0x2b3   : > { %1796 = vst [vmem:[#allocation17_spill] sm:$0xff] %v1504_v26  ;;  %v1510_v1 = vpop.eup %1099 }
 0x2b4   : > { %1101 = vpow2.f32 %v742_v10  ;;  %626 = vmax.xlane.f32.xlu2 %v625_v5 }
 0x2b5   : > { %1103 = vpow2.f32 %v744_v63 }
 0x2b7   : > { %v564_v0 = vpop.xlane.xlu2 %563 }
 0x2b8   : > { %v650_v14 = vsub.f32 %v1348_v59, %v564_v0  ;;  %v651_v5 = vsub.f32 %v1350_v60, %v564_v0 }
 0x2b9   : > { %v1512_v2 = vpop.f32.mrf.mxu2  ;;  %v1514_v22 = vpop.f32.mrf.mxu3 }
 0x2ba   : > { %1797 = vst [vmem:[#allocation18_spill] sm:$0xff] %v1512_v2  ;;  %v1516_v35 = vpop.eup %1101  ;;  %v628_v19 = vmax.f32 %v1512_v2, %v1514_v22  ;;  %v730_v39 = vmul.f32 1.442695, %v650_v14  ;;  %v732_v15 = vmul.f32 1.442695, %v651_v5 }
 0x2bb   : > { %1798 = vst [vmem:[#allocation19_spill] sm:$0xff] %v1514_v22  ;;  %v1521_v13 = vpop.eup %1103 }
 0x2bc   : > { %629 = vmax.xlane.f32.xlu0 %v628_v19  ;;  %1105 = vpow2.f32 %v730_v39 }
 0x2bd   : > { %1107 = vpow2.f32 %v732_v15 }
 0x2bf   : > { %v567_v63 = vpop.xlane.xlu2 %566 }
 0x2c0   : > { %v652_v32 = vsub.f32 %v1352_v61, %v567_v63  ;;  %v653_v59 = vsub.f32 %v1354_v62, %v567_v63  ;;  %v579_v62 = vpop.xlane.xlu0 %578 }
 0x2c1   : > { %v1530_v23 = vpop.f32.mrf.mxu2  ;;  %v1532_v26 = vpop.f32.mrf.mxu3 }
 0x2c2   : > { %1799 = vst [vmem:[#allocation20_spill] sm:$0xff] %v1530_v23  ;;  %v734_v60 = vmul.f32 1.442695, %v652_v32  ;;  %v736_v0 = vmul.f32 1.442695, %v653_v59  ;;  %v631_v19 = vmax.f32 %v1530_v23, %v1532_v26  ;;  %v1536_v5 = vpop.eup %1105  ;;  %v658_v23 = vsub.f32 %v1368_v3, %v1482_v42 }
 0x2c3   : > { %1800 = vst [vmem:[#allocation21_spill] sm:$0xff] %v1532_v26  ;;  %v1538_v61 = vpop.eup %1107 }
 0x2c4   : > { %1109 = vpow2.f32 %v734_v60  ;;  %632 = vmax.xlane.f32.xlu2 %v631_v19  ;;  %v188_v60 = vld [vmem:[%s1758_s2 + $0x10] sm:$0xff]  ;;  %v746_v45 = vmul.f32 1.442695, %v658_v23  ;;  %v592_v23 = vmax.f32 %v1416_v27, %v1418_v28 }
 0x2c5   : > { %1111 = vpow2.f32 %v736_v0 }
 0x2c7   : > { %v558_v14 = vpop.xlane.xlu2 %557 }
 0x2c8   : > { %v646_v36 = vsub.f32 %v1338_v55, %v558_v14  ;;  %v647_v32 = vsub.f32 %v1340_v56, %v558_v14  ;;  %v1555_v26 = vpop.xlane.xlu0 %551 }
 0x2ca   : > { %v1540_v63 = vpop.eup %1109  ;;  %v722_v0 = vmul.f32 1.442695, %v646_v36  ;;  %v724_v19 = vmul.f32 1.442695, %v647_v32 }
 0x2cb   : > { %v1543_v39 = vpop.eup %1111 }
 0x2cc   : > { %1113 = vpow2.f32 %v722_v0  ;;  %v182_v0 = vld [vmem:[%s1757_s1 + $0x20] sm:$0xff] }
 0x2cd   : > { %1115 = vpow2.f32 %v724_v19  ;;  %v185_v19 = vpack.c.bf16 %v182_v0, %v182_v0  ;;  %v659_v0 = vsub.f32 %v1370_v4, %v1482_v42 }
 0x2cf   : > { %v561_v10 = vpop.xlane.xlu2 %560  ;;  %1040 = vmatmul.msk.bf16.gmra.mxu0 %vm216_vm0, %v185_v19  ;;  %1043 = vmatmul.msk.bf16.gmra.mxu1 %vm216_vm0, %v185_v19  ;;  %v660_v19 = vsub.f32 %v1374_v6, %v579_v62 }
 0x2d0   : > { %v648_v29 = vsub.f32 %v1342_v57, %v561_v10  ;;  %v649_v55 = vsub.f32 %v1344_v58, %v561_v10  ;;  %203 = vperm.xlu0 %1091, %v188_v60   ;;  %v189_v57 = vld [vmem:[%s1758_s2 + $0x18] sm:$0xff]  ;;  %v1574_v60 = vpop.xlane.xlu0 %545 }
 0x2d1   : > { %v750_v42 = vmul.f32 1.442695, %v660_v19 }
 0x2d2   : > { %v726_v56 = vmul.f32 1.442695, %v648_v29  ;;  %v728_v14 = vmul.f32 1.442695, %v649_v55  ;;  %v1559_v15 = vpop.eup %1113 }
 0x2d3   : > { %v1561_v36 = vpop.eup %1115 }
 0x2d4   : > { %1117 = vpow2.f32 %v726_v56  ;;  %v582_v56 = vpop.xlane.xlu1 %581 }
 0x2d5   : > { %1119 = vpow2.f32 %v728_v14  ;;  %v662_v32 = vsub.f32 %v1384_v11, %v582_v56  ;;  %v663_v29 = vsub.f32 %v1386_v12, %v582_v56  ;;  %v661_v11 = vsub.f32 %v1376_v7, %v579_v62 }
 0x2d6   : > { %v748_v56 = vmul.f32 1.442695, %v659_v0 }
 0x2d7   : > { %v1557_v59 = vpop.xlane.xlu2 %554  ;;  %v754_v22 = vmul.f32 1.442695, %v662_v32  ;;  %v756_v2 = vmul.f32 1.442695, %v663_v29  ;;  %v752_v29 = vmul.f32 1.442695, %v661_v11 }
 0x2d8   : > { %v1583_v14 = vpop.xlane.xlu0 %539 }
 0x2d9   : > { %1801 = vst [vmem:[#allocation22_spill] sm:$0xff] %v1583_v14  ;;  %1121 = vpow2.f32 %v754_v22 }
 0x2da   : > { %v1566_v58 = vpop.eup %1117  ;;  %1123 = vpow2.f32 %v756_v2 }
 0x2db   : > { %v1568_v10 = vpop.eup %1119 }
 0x2dc   : > { %208 = vperm.xlu2 %1092, %v189_v57  }
 0x2df   : > { %v1579_v55 = vpop.xlane.xlu2 %548  ;;  %v1122_v7 = vpop.eup %1121 }
 0x2e0   : > { %v600_v44 = vpop.xlane.xlu0 %599 }
 0x2e1   : > { %v674_v12 = vsub.f32 %v1428_v33, %v600_v44  ;;  %v675_v4 = vsub.f32 %v1430_v34, %v600_v44  ;;  %v1124_v44 = vpop.eup %1123 }
 0x2e3   : > { %v778_v6 = vmul.f32 1.442695, %v674_v12 }
 0x2e7   : > { %v1585_v57 = vpop.xlane.xlu2 %542 }
 0x2ef   : > { %v585_v43 = vpop.xlane.xlu2 %584 }
 0x2f0   : > { %v664_v14 = vsub.f32 %v1394_v16, %v585_v43  ;;  %v665_v46 = vsub.f32 %v1396_v17, %v585_v43  ;;  %v780_v43 = vmul.f32 1.442695, %v675_v4  ;;  %v606_v16 = vpop.xlane.xlu0 %605 }
 0x2f2   : > { %v758_v3 = vmul.f32 1.442695, %v664_v14  ;;  %v760_v32 = vmul.f32 1.442695, %v665_v46  ;;  %v679_v14 = vsub.f32 %v1444_v41, %v606_v16  ;;  %v586_v41 = vmax.f32 %v1402_v20, %v1404_v21 }
 0x2f4   : > { %1125 = vpow2.f32 %v758_v3 }
 0x2f5   : > { %1127 = vpow2.f32 %v760_v32  ;;  %v788_v32 = vmul.f32 1.442695, %v679_v14  ;;  %v1802_v14 = vpack.c.bf16 %v1516_v35, %v1508_v18  ;;  %v1804_v18 = vpack.c.bf16 %v1540_v63, %v1536_v5 }
 0x2f6   : > { %1129 = vpow2.f32 %v746_v45  ;;  %v678_v45 = vsub.f32 %v1442_v40, %v606_v16  ;;  %v638_v5 = vsub.f32 %v1318_v47, %v1574_v60 }
 0x2f7   : > { %1131 = vpow2.f32 %v748_v56  ;;  %v603_v17 = vpop.xlane.xlu2 %602 }
 0x2f8   : > { %1133 = vpow2.f32 %v750_v42  ;;  %v676_v33 = vsub.f32 %v1436_v37, %v603_v17  ;;  %v677_v46 = vsub.f32 %v1438_v38, %v603_v17  ;;  %v786_v12 = vmul.f32 1.442695, %v678_v45 }
 0x2f9   : > { %1135 = vpow2.f32 %v752_v29 }
 0x2fa   : > { %v1126_v34 = vpop.eup %1125  ;;  %1137 = vpow2.f32 %v778_v6  ;;  %v782_v2 = vmul.f32 1.442695, %v676_v33  ;;  %v784_v22 = vmul.f32 1.442695, %v677_v46  ;;  %593 = vmax.xlane.f32.xlu0 %v592_v23 }
 0x2fb   : > { %v1128_v62 = vpop.eup %1127  ;;  %1139 = vpow2.f32 %v780_v43  ;;  %v840_v0 = vpack.c.bf16 %v1126_v34, %v1122_v7  ;;  %v595_v7 = vmax.f32 %v1422_v30, %v1424_v31 }
 0x2fc   : > { %v1130_v37 = vpop.eup %1129  ;;  %1141 = vpow2.f32 %v782_v2  ;;  %v841_v38 = vpack.c.bf16 %v1128_v62, %v1124_v44  ;;  %v589_v44 = vmax.f32 %v1410_v24, %v1412_v25 }
 0x2fd   : > { %v1132_v19 = vpop.eup %1131  ;;  %1143 = vpow2.f32 %v784_v22  ;;  %858 = vmatpush.bf16.xpose.msrb.mxu0 %v840_v0  ;;  %v1803_v0 = vpack.c.bf16 %v1521_v13, %v1510_v1  ;;  %v1805_v1 = vpack.c.bf16 %v1543_v39, %v1538_v61  ;;  %v639_v61 = vsub.f32 %v1320_v48, %v1574_v60  ;;  %v1808_v60 = vld [vmem:[#allocation4_spill] sm:$0xff] }
 0x2fe   : > { %v1134_v11 = vpop.eup %1133  ;;  %876 = vmatpush.bf16.xpose.msrb.mxu1 %v841_v38  ;;  %1145 = vpow2.f32 %v786_v12  ;;  %v645_v38 = vsub.f32 %v1334_v54, %v1557_v59  ;;  %v1807_v39 = vpack.c.bf16 %v1568_v10, %v1561_v36 }
 0x2ff   : > { %v1136_v3 = vpop.eup %1135  ;;  %v609_v40 = vpop.xlane.xlu2 %608  ;;  %1147 = vpow2.f32 %v788_v32 }
 0x300   : > { %v1605_v56 = vpop.eup %1137  ;;  %v680_v4 = vsub.f32 %v1450_v8, %v609_v40  ;;  %v681_v42 = vsub.f32 %v1452_v9, %v609_v40  ;;  %v838_v8 = vpack.c.bf16 %v1134_v11, %v1130_v37  ;;  %v839_v33 = vpack.c.bf16 %v1136_v3, %v1132_v19 }
 0x301   : > { %v1611_v29 = vpop.eup %1139  ;;  %v644_v37 = vsub.f32 %v1332_v53, %v1557_v59  ;;  %v642_v19 = vsub.f32 %v1328_v51, %v1555_v26  ;;  %v643_v11 = vsub.f32 %v1330_v52, %v1555_v26  ;;  %v720_v13 = vmul.f32 1.442695, %v645_v38  ;;  %v1657_v53 = vpop.xlane.xlu0 %611  ;;  %v190_v52 = vld [vmem:[%s1758_s2 + $0x20] sm:$0xff] }
 0x302   : > { %v1613_v6 = vpop.eup %1141  ;;  %v790_v43 = vmul.f32 1.442695, %v680_v4  ;;  %v792_v16 = vmul.f32 1.442695, %v681_v42  ;;  %587 = vmax.xlane.f32.xlu0 %v586_v41  ;;  %v640_v51 = vsub.f32 %v1322_v49, %v1579_v55  ;;  %v641_v26 = vsub.f32 %v1324_v50, %v1579_v55  ;;  %v1809_v4 = vld [vmem:[#allocation5_spill] sm:$0xff]  ;;  %v1810_v42 = vld [vmem:[#allocation22_spill] sm:$0xff] }
 0x303   : > { %v1615_v17 = vpop.eup %1143  ;;  %v846_v9 = vpack.c.bf16 %v1613_v6, %v1605_v56  ;;  %v718_v35 = vmul.f32 1.442695, %v644_v37  ;;  %v714_v12 = vmul.f32 1.442695, %v642_v19  ;;  %v716_v54 = vmul.f32 1.442695, %v643_v11 }
 0x304   : > { %1149 = vpow2.f32 %v790_v43  ;;  %v847_v46 = vpack.c.bf16 %v1615_v17, %v1611_v29  ;;  %v1623_v23 = vpop.eup %1145  ;;  %v1806_v49 = vpack.c.bf16 %v1566_v58, %v1559_v15  ;;  %v710_v63 = vmul.f32 1.442695, %v640_v51  ;;  %v1811_v41 = vld [vmem:[#allocation2_spill] sm:$0xff] }
 0x305   : > { %1151 = vpow2.f32 %v792_v16  ;;  %596 = vmax.xlane.f32.xlu2 %v595_v7  ;;  %859 = vmatpush.bf16.xpose.msrb.mxu0 %v838_v8  ;;  %v1627_v34 = vpop.eup %1147  ;;  %v712_v59 = vmul.f32 1.442695, %v641_v26  ;;  %v706_v3 = vmul.f32 1.442695, %v638_v5  ;;  %v708_v40 = vmul.f32 1.442695, %v639_v61 }
 0x306   : > { %877 = vmatpush.bf16.xpose.msrb.mxu1 %v839_v33  ;;  %1153 = vpow2.f32 %v718_v35  ;;  %v636_v15 = vsub.f32 %v1808_v60, %v1585_v57  ;;  %v637_v36 = vsub.f32 %v1809_v4, %v1585_v57  ;;  %v634_v43 = vsub.f32 %v1811_v41, %v1810_v42  ;;  %v1812_v7 = vld [vmem:[#allocation3_spill] sm:$0xff]  ;;  %v1813_v26 = vld [vmem:[#allocation18_spill] sm:$0xff]  ;;  %v1815_v60 = vld [vmem:[#allocation20_spill] sm:$0xff] }
 0x307   : > { %1155 = vpow2.f32 %v720_v13  ;;  %v1676_v50 = vpop.xlane.xlu2 %614  ;;  %v635_v8 = vsub.f32 %v1812_v7, %v1810_v42  ;;  %v1818_v42 = vld [vmem:[#allocation17_spill] sm:$0xff]  ;;  %v1819_v7 = vld [vmem:[#allocation14_spill] sm:$0xff]  ;;  %v1238_v56 = vmov 1  }
 0x308   : > { %1157 = vpow2.f32 %v714_v12  ;;  %v702_v33 = vmul.f32 1.442695, %v636_v15  ;;  %v698_v38 = vmul.f32 1.442695, %v634_v43  ;;  %1094 = vset.pattern.permute.xlu1 %v1238_v56  ;;  %1093 = vset.pattern.permute.xlu0 %v1238_v56 }
 0x309   : > { %1159 = vpow2.f32 %v716_v54  ;;  %v700_v19 = vmul.f32 1.442695, %v635_v8 }
 0x30a   : > { %v1629_v45 = vpop.eup %1149  ;;  %590 = vmax.xlane.f32.xlu0 %v589_v44  ;;  %1161 = vpow2.f32 %v710_v63  ;;  %v704_v44 = vmul.f32 1.442695, %v637_v36  ;;  %v1817_v36 = vld [vmem:[#allocation16_spill] sm:$0xff] }
 0x30b   : > { %v1631_v2 = vpop.eup %1151  ;;  %v848_v22 = vpack.c.bf16 %v1629_v45, %v1623_v23  ;;  %1163 = vpow2.f32 %v712_v59 }
 0x30c   : > { %v849_v62 = vpack.c.bf16 %v1631_v2, %v1627_v34  ;;  %v1154_v47 = vpop.eup %1153  ;;  %1165 = vpow2.f32 %v706_v3  ;;  %v943_v34 = vld [vmem:[%s1758_s2 + $0x8] sm:$0xff]  ;;  %v942_v2 = vld [vmem:[%s1758_s2] sm:$0xff] }
 0x30d   : > { %860 = vmatpush.bf16.xpose.msrb.mxu0 %v1802_v14  ;;  %v1156_v32 = vpop.eup %1155  ;;  %1167 = vpow2.f32 %v708_v40  ;;  %951 = vperm.xlu1 %1094, %v943_v34  }
 0x30e   : > { %878 = vmatpush.bf16.xpose.msrb.mxu1 %v1803_v0  ;;  %v1158_v48 = vpop.eup %1157  ;;  %1169 = vpow2.f32 %v702_v33  ;;  %v1820_v33 = vld [vmem:[#allocation15_spill] sm:$0xff] }
 0x30f   : > { %v1678_v55 = vpop.xlane.xlu0 %617  ;;  %v1160_v58 = vpop.eup %1159  ;;  %v830_v10 = vpack.c.bf16 %v1154_v47, %v1158_v48  ;;  %1171 = vpow2.f32 %v704_v44 }
 0x310   : > { %v831_v16 = vpack.c.bf16 %v1156_v32, %v1160_v58  ;;  %v1162_v37 = vpop.eup %1161  ;;  %1173 = vpow2.f32 %v698_v38  ;;  %v240_v47 = vpop.f32.mrf.mxu0  ;;  %v1816_v58 = vld [vmem:[#allocation21_spill] sm:$0xff] }
 0x311   : > { %v1164_v57 = vpop.eup %1163  ;;  %1175 = vpow2.f32 %v700_v19  ;;  %v263_v32 = vpop.f32.mrf.mxu1 }
 0x312   : > { %v1166_v11 = vpop.eup %1165 }
 0x313   : > { %v828_v35 = vpack.c.bf16 %v1162_v37, %v1166_v11 }
 0x315   : > { %861 = vmatpush.bf16.xpose.msrb.mxu0 %v1804_v18  ;;  %v1168_v18 = vpop.eup %1167 }
 0x316   : > { %879 = vmatpush.bf16.xpose.msrb.mxu1 %v1805_v1  ;;  %v829_v1 = vpack.c.bf16 %v1164_v57, %v1168_v18  ;;  %v1170_v54 = vpop.eup %1169 }
 0x317   : > { %v1688_v14 = vpop.xlane.xlu2 %620  ;;  %v1172_v51 = vpop.eup %1171 }
 0x318   : > { %v242_v57 = vpop.f32.mrf.mxu0 }
 0x31d   : > { %213 = vperm.xlu2 %1092, %v190_v52   ;;  %862 = vmatpush.bf16.xpose.msrb.mxu0 %v1806_v49  ;;  %v1174_v52 = vpop.eup %1173  ;;  %v1814_v49 = vld [vmem:[#allocation19_spill] sm:$0xff] }
 0x31e   : > { %880 = vmatpush.bf16.xpose.msrb.mxu1 %v1807_v39  ;;  %v1176_v61 = vpop.eup %1175  ;;  %v826_v39 = vpack.c.bf16 %v1170_v54, %v1174_v52  ;;  %v1821_v54 = vld [vmem:[#allocation12_spill] sm:$0xff]  ;;  %v1822_v52 = vld [vmem:[#allocation13_spill] sm:$0xff]  ;;  %946 = vperm.xlu0 %1093, %v942_v2  }
 0x31f   : > { %v624_v0 = vpop.xlane.xlu0 %623  ;;  %v827_v59 = vpack.c.bf16 %v1172_v51, %v1176_v61  ;;  %v688_v51 = vsub.f32 %v1821_v54, %v1688_v14 }
 0x320   : > { %v690_v8 = vsub.f32 %v1819_v7, %v624_v0  ;;  %v691_v44 = vsub.f32 %v1820_v33, %v624_v0  ;;  %v1826_v7 = vld [vmem:[#allocation9_spill] sm:$0xff] }
 0x322   : > { %v810_v18 = vmul.f32 1.442695, %v690_v8  ;;  %v685_v8 = vsub.f32 %v1826_v7, %v1676_v50 }
 0x325   : > { %863 = vmatpush.bf16.xpose.msrb.mxu0 %v830_v10 }
 0x326   : > { %881 = vmatpush.bf16.xpose.msrb.mxu1 %v831_v16 }
 0x327   : > { %v627_v13 = vpop.xlane.xlu2 %626 }
 0x328   : > { %v692_v10 = vsub.f32 %v1817_v36, %v627_v13  ;;  %v693_v41 = vsub.f32 %v1818_v42, %v627_v13 }
 0x32a   : > { %v814_v37 = vmul.f32 1.442695, %v692_v10  ;;  %v816_v38 = vmul.f32 1.442695, %v693_v41 }
 0x32d   : > { %864 = vmatpush.bf16.xpose.msrb.mxu0 %v828_v35  ;;  %v265_v35 = vpop.f32.mrf.mxu1 }
 0x32e   : > { %882 = vmatpush.bf16.xpose.msrb.mxu1 %v829_v1 }
 0x32f   : > { %v630_v12 = vpop.xlane.xlu0 %629 }
 0x330   : > { %v694_v5 = vsub.f32 %v1813_v26, %v630_v12  ;;  %v695_v63 = vsub.f32 %v1814_v49, %v630_v12  ;;  %v812_v12 = vmul.f32 1.442695, %v691_v44  ;;  %v689_v26 = vsub.f32 %v1822_v52, %v1688_v14  ;;  %v1827_v44 = vld [vmem:[#allocation6_spill] sm:$0xff] }
 0x332   : > { %v818_v3 = vmul.f32 1.442695, %v694_v5  ;;  %v820_v40 = vmul.f32 1.442695, %v695_v63 }
 0x334   : > { %1177 = vpow2.f32 %v818_v3  ;;  %v1823_v3 = vld [vmem:[#allocation10_spill] sm:$0xff] }
 0x335   : > { %865 = vmatpush.bf16.xpose.msrb.mxu0 %v826_v39  ;;  %1179 = vpow2.f32 %v820_v40  ;;  %v686_v40 = vsub.f32 %v1823_v3, %v1678_v55 }
 0x336   : > { %883 = vmatpush.bf16.xpose.msrb.mxu1 %v827_v59 }
 0x337   : > { %v633_v48 = vpop.xlane.xlu2 %632  ;;  %v802_v10 = vmul.f32 1.442695, %v686_v40 }
 0x338   : > { %v696_v15 = vsub.f32 %v1815_v60, %v633_v48  ;;  %v697_v4 = vsub.f32 %v1816_v58, %v633_v48  ;;  %v1824_v60 = vld [vmem:[#allocation11_spill] sm:$0xff] }
 0x33a   : > { %v822_v43 = vmul.f32 1.442695, %v696_v15  ;;  %v824_v16 = vmul.f32 1.442695, %v697_v4  ;;  %v1178_v11 = vpop.eup %1177  ;;  %v687_v15 = vsub.f32 %v1824_v60, %v1678_v55  ;;  %v806_v4 = vmul.f32 1.442695, %v688_v51 }
 0x33b   : > { %v1180_v1 = vpop.eup %1179  ;;  %v1825_v55 = vld [vmem:[#allocation8_spill] sm:$0xff] }
 0x33c   : > { %1181 = vpow2.f32 %v822_v43  ;;  %v804_v42 = vmul.f32 1.442695, %v687_v15  ;;  %v684_v43 = vsub.f32 %v1825_v55, %v1676_v50 }
 0x33d   : > { %1183 = vpow2.f32 %v824_v16 }
 0x33e   : > { %1185 = vpow2.f32 %v814_v37  ;;  %v682_v37 = vsub.f32 %v1827_v44, %v1657_v53 }
 0x33f   : > { %v209_v19 = vpop.permute.xlu2 %208  ;;  %1187 = vpow2.f32 %v816_v38 }
 0x340   : > { %v243_v0 = vadd.f32 %v242_v57, %v209_v19  ;;  %v266_v49 = vadd.f32 %v265_v35, %v209_v19  ;;  %1189 = vpow2.f32 %v810_v18  ;;  %v1828_v57 = vld [vmem:[#allocation7_spill] sm:$0xff]  ;;  %v800_v18 = vmul.f32 1.442695, %v685_v8 }
 0x341   : > { %1191 = vpow2.f32 %v812_v12  ;;  %v683_v19 = vsub.f32 %v1828_v57, %v1657_v53 }
 0x342   : > { %v1182_v13 = vpop.eup %1181  ;;  %v204_v5 = vpop.permute.xlu0 %203  ;;  %1193 = vpow2.f32 %v806_v4 }
 0x343   : > { %v1184_v61 = vpop.eup %1183  ;;  %v241_v63 = vadd.f32 %v240_v47, %v204_v5  ;;  %v264_v39 = vadd.f32 %v263_v32, %v204_v5  ;;  %v856_v59 = vpack.c.bf16 %v1182_v13, %v1178_v11  ;;  %v808_v47 = vmul.f32 1.442695, %v689_v26 }
 0x344   : > { %v857_v48 = vpack.c.bf16 %v1184_v61, %v1180_v1  ;;  %v1186_v36 = vpop.eup %1185  ;;  %v798_v11 = vmul.f32 1.442695, %v684_v43  ;;  %v794_v1 = vmul.f32 1.442695, %v682_v37  ;;  %v796_v13 = vmul.f32 1.442695, %v683_v19 }
 0x345   : > { %v1706_v58 = vpack.c.bf16 %v243_v0, %v241_v63  ;;  %v1708_v14 = vpack.c.bf16 %v266_v49, %v264_v39  ;;  %894 = vmatpush.bf16.xpose.msra.mxu0 %v856_v59  ;;  %v1188_v32 = vpop.eup %1187  ;;  %1195 = vpow2.f32 %v808_v47 }
 0x346   : > { %912 = vmatpush.bf16.xpose.msra.mxu1 %v857_v48  ;;  %v1190_v41 = vpop.eup %1189  ;;  %1197 = vpow2.f32 %v802_v10 }
 0x347   : > { %866 = vmatmul.bf16.vlgmr.msrb.gmra.mxu0 %v1706_v58  ;;  %884 = vmatmul.bf16.vlgmr.msrb.gmra.mxu1 %v1708_v14  ;;  %v1192_v16 = vpop.eup %1191  ;;  %v854_v33 = vpack.c.bf16 %v1186_v36, %v1190_v41  ;;  %1199 = vpow2.f32 %v804_v42 }
 0x348   : > { %v855_v38 = vpack.c.bf16 %v1188_v32, %v1192_v16  ;;  %v1194_v35 = vpop.eup %1193  ;;  %1201 = vpow2.f32 %v798_v11 }
 0x349   : > { %1203 = vpow2.f32 %v800_v18 }
 0x34a   : > { %1205 = vpow2.f32 %v794_v1 }
 0x34b   : > { %v1196_v12 = vpop.eup %1195  ;;  %1207 = vpow2.f32 %v796_v13 }
 0x34c   : > { %v1198_v50 = vpop.eup %1197  ;;  %v245_v63 = vpop.f32.mrf.mxu0 }
 0x34d   : > { %895 = vmatpush.bf16.xpose.msra.mxu0 %v854_v33  ;;  %v1200_v54 = vpop.eup %1199  ;;  %v852_v51 = vpack.c.bf16 %v1194_v35, %v1198_v50  ;;  %v268_v39 = vpop.f32.mrf.mxu1 }
 0x34e   : > { %913 = vmatpush.bf16.xpose.msra.mxu1 %v855_v38  ;;  %v853_v52 = vpack.c.bf16 %v1196_v12, %v1200_v54  ;;  %v1202_v53 = vpop.eup %1201 }
 0x34f   : > { %v1204_v26 = vpop.eup %1203 }
 0x350   : > { %v1206_v0 = vpop.eup %1205 }
 0x351   : > { %v1208_v5 = vpop.eup %1207  ;;  %v850_v61 = vpack.c.bf16 %v1202_v53, %v1206_v0 }
 0x352   : > { %v851_v49 = vpack.c.bf16 %v1204_v26, %v1208_v5 }
 0x354   : > { %v247_v59 = vpop.f32.mrf.mxu0 }
 0x355   : > { %896 = vmatpush.bf16.xpose.msra.mxu0 %v852_v51  ;;  %v270_v3 = vpop.f32.mrf.mxu1 }
 0x356   : > { %914 = vmatpush.bf16.xpose.msra.mxu1 %v853_v52 }
 0x35d   : > { %897 = vmatpush.bf16.xpose.msra.mxu0 %v850_v61 }
 0x35e   : > { %915 = vmatpush.bf16.xpose.msra.mxu1 %v851_v49 }
 0x365   : > { %898 = vmatpush.bf16.xpose.msra.mxu0 %v848_v22 }
 0x366   : > { %916 = vmatpush.bf16.xpose.msra.mxu1 %v849_v62 }
 0x36d   : > { %v594_v40 = vpop.xlane.xlu0 %593  ;;  %899 = vmatpush.bf16.xpose.msra.mxu0 %v846_v9 }
 0x36e   : > { %917 = vmatpush.bf16.xpose.msra.mxu1 %v847_v46  ;;  %v670_v48 = vsub.f32 %v1416_v27, %v594_v40  ;;  %v671_v23 = vsub.f32 %v1418_v28, %v594_v40 }
 0x370   : > { %v770_v22 = vmul.f32 1.442695, %v670_v48  ;;  %v772_v6 = vmul.f32 1.442695, %v671_v23 }
 0x372   : > { %1209 = vpow2.f32 %v770_v22 }
 0x373   : > { %1211 = vpow2.f32 %v772_v6 }
 0x375   : > { %v588_v45 = vpop.xlane.xlu0 %587 }
 0x376   : > { %v666_v46 = vsub.f32 %v1402_v20, %v588_v45  ;;  %v667_v60 = vsub.f32 %v1404_v21, %v588_v45 }
 0x378   : > { %v597_v29 = vpop.xlane.xlu2 %596  ;;  %v1210_v32 = vpop.eup %1209  ;;  %v764_v55 = vmul.f32 1.442695, %v667_v60 }
 0x379   : > { %v672_v27 = vsub.f32 %v1422_v30, %v597_v29  ;;  %v673_v28 = vsub.f32 %v1424_v31, %v597_v29  ;;  %v762_v31 = vmul.f32 1.442695, %v666_v46  ;;  %v1212_v41 = vpop.eup %1211 }
 0x37b   : > { %v774_v17 = vmul.f32 1.442695, %v672_v27  ;;  %v776_v9 = vmul.f32 1.442695, %v673_v28 }
 0x37d   : > { %1213 = vpow2.f32 %v774_v17  ;;  %v591_v62 = vpop.xlane.xlu0 %590 }
 0x37e   : > { %1215 = vpow2.f32 %v776_v9  ;;  %v668_v15 = vsub.f32 %v1410_v24, %v591_v62  ;;  %v669_v4 = vsub.f32 %v1412_v25, %v591_v62  ;;  %v1239_v25 = vmov 2  }
 0x37f   : > { %1095 = vset.pattern.permute.xlu2 %v1239_v25  ;;  %1096 = vset.pattern.permute.xlu0 %v1239_v25  ;;  %v952_v61 = vpop.permute.xlu1 %951 }
 0x380   : > { %v766_v36 = vmul.f32 1.442695, %v668_v15  ;;  %v768_v47 = vmul.f32 1.442695, %v669_v4  ;;  %v214_v30 = vpop.permute.xlu2 %213  ;;  %959 = vperm.xlu2 %1095, %v942_v2  }
 0x381   : > { %v246_v10 = vadd.f32 %v245_v63, %v214_v30  ;;  %v269_v42 = vadd.f32 %v268_v39, %v214_v30 }
 0x382   : > { %1217 = vpow2.f32 %v766_v36 }
 0x383   : > { %v1214_v43 = vpop.eup %1213  ;;  %v278_v20 = vpack.c.bf16 %v246_v10, %v246_v10  ;;  %v279_v16 = vpack.c.bf16 %v269_v42, %v269_v42  ;;  %1219 = vpow2.f32 %v768_v47 }
 0x384   : > { %v1216_v7 = vpop.eup %1215  ;;  %v844_v21 = vpack.c.bf16 %v1214_v43, %v1210_v32  ;;  %1221 = vpow2.f32 %v762_v31 }
 0x385   : > { %871 = vmatmul.bf16.gmra.mxu0 %v278_v20  ;;  %889 = vmatmul.bf16.gmra.mxu1 %v279_v16  ;;  %v845_v24 = vpack.c.bf16 %v1216_v7, %v1212_v41  ;;  %1223 = vpow2.f32 %v764_v55 }
 0x386   : > { %900 = vmatpush.bf16.xpose.msra.mxu0 %v844_v21 }
 0x387   : > { %918 = vmatpush.bf16.xpose.msra.mxu1 %v845_v24 }
 0x388   : > { %v1218_v8 = vpop.eup %1217  ;;  %963 = vperm.xlu2 %1095, %v943_v34  }
 0x389   : > { %v1220_v33 = vpop.eup %1219 }
 0x38a   : > { %v1222_v44 = vpop.eup %1221 }
 0x38b   : > { %v1224_v37 = vpop.eup %1223  ;;  %v842_v38 = vpack.c.bf16 %v1218_v8, %v1222_v44 }
 0x38c   : > { %v843_v57 = vpack.c.bf16 %v1220_v33, %v1224_v37 }
 0x38e   : > { %901 = vmatpush.bf16.xpose.msra.mxu0 %v842_v38 }
 0x38f   : > { %919 = vmatpush.bf16.xpose.msra.mxu1 %v843_v57 }
 0x390   : > { %v947_v5 = vpop.permute.xlu0 %946 }
 0x395   : > { %902 = vmatmul.bf16.vlgmr.msra.gmra.mxu0 %v1706_v58 }
 0x396   : > { %920 = vmatmul.bf16.vlgmr.msra.gmra.mxu1 %v1708_v14 }
 0x3a5   : > { %907 = vmatmul.bf16.gmra.mxu0 %v278_v20 }
 0x3a6   : > { %925 = vmatmul.bf16.gmra.mxu1 %v279_v16 }
 0x3c4   : > { %v867_v19 = vpop.f32.mrf.mxu0  ;;  %v885_v11 = vpop.f32.mrf.mxu1 }
 0x3c5   : > { %v886_v53 = vadd.f32 %v885_v11, %v867_v19 }
 0x3cc   : > { %v869_v18 = vpop.f32.mrf.mxu0  ;;  %v887_v35 = vpop.f32.mrf.mxu1 }
 0x3cd   : > { %v888_v26 = vadd.f32 %v887_v35, %v869_v18 }
 0x3da   : > { %v960_v50 = vpop.permute.xlu2 %959 }
 0x3e2   : > { %v964_v39 = vpop.permute.xlu2 %963 }
 0x402   : > { %v872_v1 = vpop.f32.mrf.mxu0  ;;  %v890_v12 = vpop.f32.mrf.mxu1 }
 0x403   : > { %v891_v13 = vadd.f32 %v890_v12, %v872_v1 }
 0x405   : > { %1225 = vrcp.f32 %v891_v13 }
 0x40a   : > { %v874_v54 = vpop.f32.mrf.mxu0  ;;  %v892_v51 = vpop.f32.mrf.mxu1 }
 0x40b   : > { %v1226_v52 = vpop.eup %1225 }
 0x40c   : > { %v932_v58 = vperm.slane %v1226_v52, 0 }
 0x40e   : > { %v934_v0 = vmul.f32 %v932_v58, %v886_v53  ;;  %v936_v14 = vmul.f32 %v932_v58, %v888_v26 }
 0x410   : > { %v938_v49 = vmax.f32 %v934_v0, 0.0  ;;  %v940_v63 = vmax.f32 %v936_v14, 0.0 }
 0x412   : > { %v954_v59 = vmul.f32 %v947_v5, %v938_v49  ;;  %v956_v3 = vmul.f32 %v952_v61, %v940_v63  ;;  %v903_v40 = vpop.f32.mrf.mxu0 }
 0x413   : > { %v921_v48 = vpop.f32.mrf.mxu1 }
 0x414   : > { %v966_v23 = vadd.f32 %v960_v50, %v954_v59  ;;  %v968_v45 = vadd.f32 %v964_v39, %v956_v3  ;;  %v922_v17 = vadd.f32 %v921_v48, %v903_v40 }
 0x416   : > { %970 = vst [vmem:[%s170_s20] sm:$0xff] %v966_v23 }
 0x417   : > { %972 = vst [vmem:[%s170_s20 + $0x10] sm:$0xff] %v968_v45 }
 0x41a   : > { %v905_v34 = vpop.f32.mrf.mxu0 }
 0x41b   : > { %v923_v2 = vpop.f32.mrf.mxu1 }
 0x41c   : > { %v924_v9 = vadd.f32 %v923_v2, %v905_v34 }
 0x422   : > { %v908_v22 = vpop.f32.mrf.mxu0 }
 0x423   : > { %v926_v56 = vpop.f32.mrf.mxu1 }
 0x424   : > { %v927_v6 = vadd.f32 %v926_v56, %v908_v22 }
 0x426   : > { %1227 = vrcp.f32 %v927_v6 }
 0x42a   : > { %v910_v29 = vpop.f32.mrf.mxu0 }
 0x42b   : > { %v928_v27 = vpop.f32.mrf.mxu1 }
 0x42c   : > { %v1228_v28 = vpop.eup %1227 }
 0x42d   : > { %v933_v46 = vperm.slane %v1228_v28, 0 }
 0x42f   : > { %v935_v62 = vmul.f32 %v933_v46, %v922_v17  ;;  %v937_v60 = vmul.f32 %v933_v46, %v924_v9 }
 0x431   : > { %v939_v15 = vmax.f32 %v935_v62, 0.0  ;;  %v941_v4 = vmax.f32 %v937_v60, 0.0 }
 0x433   : > { %v955_v36 = vmul.f32 %v947_v5, %v939_v15  ;;  %v957_v47 = vmul.f32 %v952_v61, %v941_v4 }
 0x435   : > { %v967_v30 = vadd.f32 %v960_v50, %v955_v36  ;;  %v969_v32 = vadd.f32 %v964_v39, %v957_v47 }
 0x437   : > { %971 = vst [vmem:[%s170_s20 + $0x8] sm:$0xff] %v967_v30 }
 0x438   : > { %973 = vst [vmem:[%s170_s20 + $0x18] sm:$0xff] %v969_v32 }
 0x439 PF: > { %s13_s12 = sadd.s32 1, %s1235_s12  }
 0x43a   : > { %p10_p4 = scmp.ge.s32.totalorder %s13_s12, 4  }
 0x43c   :  { %12 = sbr.rel (!%p10_p4) target bundleno = 1 (0x1), region = 62 }

</bundles_post_ra>
